<compile_context>
chip_gen: v7x
topology: tpu7x:2x2x1
jax: 0.10.0
libtpu: 0.0.40
codegen_flags: <defaults>
</compile_context>

<pallas_src>
import jax
import jax.numpy as jnp
from jax.experimental import pallas as pl
from jax.experimental.pallas import tpu as pltpu

_HIDDEN_CHUNK = 512  # hidden-dim chunk width used when hidden_dim > 512


def _round_up(n, m):
    return ((n + m - 1) // m) * m


def _cdiv(a, b):
    return -(-a // b)


def _approx_sigmoid(x):
    # exp + approximate reciprocal both issue on the EUP slot -> hides under MXU work.
    return pl.reciprocal(1.0 + jnp.exp(-x), approx=True)


def _exact_sigmoid(x):
    return 1.0 / (1.0 + jnp.exp(-x))


def _tpu_vmem_bytes():
    try:
        return int(pltpu.get_tpu_info().vmem_capacity_bytes)
    except Exception:
        return 64 * 1024 * 1024  # conservative (v7x per-core VMEM)


def _num_tensorcores():
    try:
        kind = jax.devices()[0].device_kind.lower()
        return 2 if ("7x" in kind or "v7" in kind) else 1
    except Exception:
        return 1


# ----------------------------- kernels ---------------------------------------


def _fd_kernel_resident(x_ref, w1_ref, w2_ref, o_ref):
    """Both (pre-transposed, hidden-padded) weights resident in VMEM."""
    w1 = w1_ref[...]                          # (K, Hp)   compute dtype (bf16)
    w2 = w2_ref[...]                          # (Hp, N)   compute dtype
    x = x_ref[...].astype(w1.dtype)           # (TM, K)   downcast only at MXU input
    h = _approx_sigmoid(jnp.dot(x, w1, preferred_element_type=jnp.float32))
    y = jnp.dot(h.astype(w2.dtype), w2, preferred_element_type=jnp.float32)
    o_ref[...] = _exact_sigmoid(y).astype(o_ref.dtype)


def _fd_kernel_chunked(x_ref, w1_ref, w2_ref, o_ref, acc_ref):
    """Hidden dim split over grid axis 1; f32 accumulator in VMEM scratch."""
    c = pl.program_id(1)

    @pl.when(c == 0)
    def _():
        acc_ref[...] = jnp.zeros_like(acc_ref)

    w1 = w1_ref[...]                          # (K, CHUNK)
    w2 = w2_ref[...]                          # (CHUNK, N)
    x = x_ref[...].astype(w1.dtype)
    h = _approx_sigmoid(jnp.dot(x, w1, preferred_element_type=jnp.float32))
    acc_ref[...] += jnp.dot(h.astype(w2.dtype), w2,
                            preferred_element_type=jnp.float32)

    @pl.when(c == pl.num_programs(1) - 1)
    def _():
        o_ref[...] = _exact_sigmoid(acc_ref[...]).astype(o_ref.dtype)


# --------------------------- init-time weight prep ----------------------------


def prepare_fd_params(w1, w2, compute_dtype=jnp.bfloat16):
    """One-time weight prep: transpose to (K, N) MXU layout, cast to the matmul
    operand dtype (bf16 default), zero-pad hidden to a lane/chunk multiple.

    w1: (hidden, input)  -- PyTorch nn.Linear layout
    w2: (output, hidden)
    """
    hidden_dim, in_dim = w1.shape
    out_dim, hidden_dim2 = w2.shape
    assert hidden_dim == hidden_dim2
    pad_mult = _HIDDEN_CHUNK if hidden_dim > _HIDDEN_CHUNK else 128
    hidden_p = _round_up(hidden_dim, pad_mult)
    # Zero padding keeps the math exact: padded W1 columns give h = sigmoid(0) = 0.5
    # but the matching W2 rows are zero, so padded lanes never reach the output.
    w1_p = (jnp.zeros((in_dim, hidden_p), compute_dtype)
            .at[:, :hidden_dim].set(w1.T.astype(compute_dtype)))
    w2_p = (jnp.zeros((hidden_p, out_dim), compute_dtype)
            .at[:hidden_dim, :].set(w2.T.astype(compute_dtype)))
    return w1_p, w2_p


# ------------------------------ forward wrapper --------------------------------


def _vmem_estimate(tm, in_dim, hidden_blk, out_dim, w_isz, x_isz, o_isz, w_bufs):
    r8 = lambda n: _round_up(n, 8)
    r128 = lambda n: _round_up(n, 128)
    w_bytes = (r8(in_dim) * r128(hidden_blk)
               + r8(hidden_blk) * r128(out_dim)) * w_isz * w_bufs
    x_bytes = 2 * r8(tm) * r128(in_dim) * x_isz          # double-buffered x tile
    o_bytes = 2 * r8(tm) * r128(out_dim) * o_isz         # double-buffered out tile
    tmp = r8(tm) * (r128(in_dim) * w_isz                  # x bf16 cast
                    + r128(hidden_blk) * (4 + w_isz)      # h (f32) + bf16 cast
                    + r128(out_dim) * 4 * 2)              # y / accumulator (f32)
    return w_bytes + x_bytes + o_bytes + tmp


def fd_model_forward(x, w1_p, w2_p, *, out_dtype=None, tile_m=None):
    """x: (B, input_dim); w1_p / w2_p: outputs of prepare_fd_params."""
    B, in_dim = x.shape
    in_dim_w, hidden_p = w1_p.shape
    hidden_p2, out_dim = w2_p.shape
    assert in_dim == in_dim_w and hidden_p == hidden_p2
    out_dtype = x.dtype if out_dtype is None else out_dtype

    chunked = hidden_p > _HIDDEN_CHUNK
    hidden_blk = _HIDDEN_CHUNK if chunked else hidden_p

    vmem_cap = _tpu_vmem_bytes()
    ntc = _num_tensorcores()
    w_isz = jnp.dtype(w1_p.dtype).itemsize
    x_isz = jnp.dtype(x.dtype).itemsize
    o_isz = jnp.dtype(out_dtype).itemsize

    # Generation-dependent batch tile: 512 on 64 MiB-VMEM chips, 1024 on 128 MiB.
    tile_cap = tile_m if tile_m is not None else (512 if vmem_cap <= (64 << 20) else 1024)
    if B <= tile_cap:
        # Split a single-tile batch across the 2 TensorCores of a v7x chip.
        tm = _round_up(_cdiv(B, 2), 8) if (ntc >= 2 and B >= 16) else B
    else:
        tm = _round_up(tile_cap, 8)
    # Shrink the tile until the (conservative) footprint comfortably fits VMEM.
    while tm > 8 and _vmem_estimate(tm, in_dim, hidden_blk, out_dim,
                                    w_isz, x_isz, o_isz, 2) > 0.7 * vmem_cap:
        tm = max(8, _round_up(tm // 2, 8))

    n_bt = _cdiv(B, tm)   # partial boundary tiles handled by Pallas' masked DMA

    cost = pl.CostEstimate(
        flops=2 * B * (in_dim * hidden_p + hidden_p * out_dim),
        transcendentals=B * (hidden_p + out_dim),
        bytes_accessed=int(x.size * x_isz + w1_p.size * w_isz + w2_p.size * w_isz
                           + B * out_dim * o_isz),
    )
    out_shape = jax.ShapeDtypeStruct((B, out_dim), out_dtype)

    def _clamp_vmem(est):
        return int(min(max(int(1.3 * est), 32 << 20), vmem_cap - (8 << 20), 128 << 20))

    def _run_resident(weight_buffers):
        vmem_limit = _clamp_vmem(_vmem_estimate(tm, in_dim, hidden_p, out_dim,
                                                w_isz, x_isz, o_isz, weight_buffers))
        w_kwargs = {"pipeline_mode": pl.Buffered(1)} if weight_buffers == 1 else {}
        return pl.pallas_call(
            _fd_kernel_resident,
            out_shape=out_shape,
            grid=(n_bt,),
            in_specs=[
                pl.BlockSpec((tm, in_dim), lambda i: (i, 0)),              # batch-tiled x
                pl.BlockSpec((in_dim, hidden_p), lambda i: (0, 0), **w_kwargs),   # resident W1
                pl.BlockSpec((hidden_p, out_dim), lambda i: (0, 0), **w_kwargs),  # resident W2
            ],
            out_specs=pl.BlockSpec((tm, out_dim), lambda i: (i, 0)),
            compiler_params=pltpu.CompilerParams(
                dimension_semantics=("parallel",),
                vmem_limit_bytes=vmem_limit),
            cost_estimate=cost,
        )(x, w1_p, w2_p)

    def _run_chunked():
        vmem_limit = _clamp_vmem(_vmem_estimate(tm, in_dim, _HIDDEN_CHUNK, out_dim,
                                                w_isz, x_isz, o_isz, 2))
        n_hc = hidden_p // _HIDDEN_CHUNK
        return pl.pallas_call(
            _fd_kernel_chunked,
            out_shape=out_shape,
            grid=(n_bt, n_hc),
            in_specs=[
                pl.BlockSpec((tm, in_dim), lambda i, c: (i, 0)),
                pl.BlockSpec((in_dim, _HIDDEN_CHUNK), lambda i, c: (0, c)),
                pl.BlockSpec((_HIDDEN_CHUNK, out_dim), lambda i, c: (c, 0)),
            ],
            out_specs=pl.BlockSpec((tm, out_dim), lambda i, c: (i, 0)),
            scratch_shapes=[pltpu.VMEM((tm, out_dim), jnp.float32)],
            compiler_params=pltpu.CompilerParams(
                dimension_semantics=("parallel", "arbitrary"),
                vmem_limit_bytes=vmem_limit),
            cost_estimate=cost,
        )(x, w1_p, w2_p)

    if chunked:
        return _run_chunked()
    try:
        return jax.block_until_ready(_run_resident(weight_buffers=1))
    except Exception:
        # Fallback if this jax build rejects single-buffered (Buffered(1)) specs.
        return _run_resident(weight_buffers=2)


# ------------------------------ reference & test -------------------------------


def reference_forward(x, w1, w2):
    h = jax.nn.sigmoid(x @ w1.T)
    return jax.nn.sigmoid(h @ w2.T)


def _run_case(key, batch, input_dim, hidden_dim, output_dim, tol):
    kx, k1, k2 = jax.random.split(key, 3)
    x = jax.random.normal(kx, (batch, input_dim), dtype=jnp.float32)
    # Deterministic init mimicking nn.Linear default (uniform +/- 1/sqrt(fan_in)).
    bound1 = 1.0 / (input_dim ** 0.5)
    bound2 = 1.0 / (hidden_dim ** 0.5)
    w1 = jax.random.uniform(k1, (hidden_dim, input_dim), jnp.float32, -bound1, bound1)
    w2 = jax.random.uniform(k2, (output_dim, hidden_dim), jnp.float32, -bound2, bound2)

    w1_p, w2_p = prepare_fd_params(w1, w2)          # bf16 operands, f32 accumulation
    out = jax.block_until_ready(fd_model_forward(x, w1_p, w2_p))
    ref = reference_forward(x, w1, w2)
    assert out.shape == (batch, output_dim), out.shape
    assert jnp.allclose(out, ref, atol=tol, rtol=tol), (
        f"mismatch vs reference: max abs err = {jnp.max(jnp.abs(out - ref))}")
    return out


if __name__ == "__main__":
    key = jax.random.PRNGKey(0)
    k1, k2 = jax.random.split(key)
    # Small FDModel: exercises the VMEM-resident-weight kernel.
    _run_case(k1, batch=8, input_dim=32, hidden_dim=64, output_dim=16, tol=3e-2)
    # Larger hidden dim + non-multiple-of-8 batch: exercises the hidden-chunked
    # accumulator kernel and partial boundary batch tiles.
    _run_case(k2, batch=37, input_dim=32, hidden_dim=1024, output_dim=16, tol=3e-2)
    print("KERNEL_OK")
</pallas_src>

<mosaic_0001>
module attributes {stable_mosaic.version = 11 : i64} {
  func.func @_fd_kernel_resident(%arg0: i32, %arg1: memref<8x32xf32, #tpu.memory_space<vmem>>, %arg2: memref<32x128xbf16, #tpu.memory_space<vmem>>, %arg3: memref<128x16xbf16, #tpu.memory_space<vmem>>, %arg4: memref<8x16xf32, #tpu.memory_space<vmem>>) attributes {dimension_semantics = [#tpu.dimension_semantics<parallel>], iteration_bounds = array<i64: 1>, scalar_prefetch = 0 : i64, scratch_operands = 0 : i64, tpu.core_type = #tpu.core_type<tc>, window_params = [{transform_indices = @transform_0, window_bounds = array<i64: 8, 32>}, {pipeline_mode = #tpu.pipeline_mode<synchronous>, transform_indices = @transform_1, window_bounds = array<i64: 32, 128>}, {pipeline_mode = #tpu.pipeline_mode<synchronous>, transform_indices = @transform_2, window_bounds = array<i64: 128, 16>}, {transform_indices = @transform_3, window_bounds = array<i64: 8, 16>}]} {
    %c0 = arith.constant 0 : index
    %c0_0 = arith.constant 0 : index
    %0 = vector.load %arg2[%c0, %c0_0] : memref<32x128xbf16, #tpu.memory_space<vmem>>, vector<32x128xbf16>
    %c0_1 = arith.constant 0 : index
    %c0_2 = arith.constant 0 : index
    %1 = vector.load %arg3[%c0_1, %c0_2] : memref<128x16xbf16, #tpu.memory_space<vmem>>, vector<128x16xbf16>
    %c0_3 = arith.constant 0 : index
    %c0_4 = arith.constant 0 : index
    %2 = vector.load %arg1[%c0_3, %c0_4] : memref<8x32xf32, #tpu.memory_space<vmem>>, vector<8x32xf32>
    %3 = arith.truncf %2 : vector<8x32xf32> to vector<8x32xbf16>
    %cst = arith.constant dense<0.000000e+00> : vector<8x128xf32>
    %4 = tpu.matmul %3, %0, %cst {dimension_numbers = #tpu.dot_dimension_numbers<[1], [0], [0], [1], [0, 0, 1, 1], [], []>} : vector<8x32xbf16>, vector<32x128xbf16>, vector<8x128xf32> -> vector<8x128xf32>
    %cst_5 = arith.constant 0.000000e+00 : f32
    %5 = vector.broadcast %cst_5 : f32 to vector<8x128xf32>
    %6 = arith.subf %5, %4 : vector<8x128xf32>
    %7 = math.exp %6 : vector<8x128xf32>
    %cst_6 = arith.constant 1.000000e+00 : f32
    %8 = vector.broadcast %cst_6 : f32 to vector<8x128xf32>
    %9 = arith.addf %8, %7 : vector<8x128xf32>
    %10 = tpu.reciprocal %9 {approx = true} : vector<8x128xf32> -> vector<8x128xf32>
    %11 = arith.truncf %10 : vector<8x128xf32> to vector<8x128xbf16>
    %cst_7 = arith.constant dense<0.000000e+00> : vector<8x16xf32>
    %12 = tpu.matmul %11, %1, %cst_7 {dimension_numbers = #tpu.dot_dimension_numbers<[1], [0], [0], [1], [0, 0, 1, 1], [], []>} : vector<8x128xbf16>, vector<128x16xbf16>, vector<8x16xf32> -> vector<8x16xf32>
    %cst_8 = arith.constant 0.000000e+00 : f32
    %13 = vector.broadcast %cst_8 : f32 to vector<8x16xf32>
    %14 = arith.subf %13, %12 : vector<8x16xf32>
    %15 = math.exp %14 : vector<8x16xf32>
    %cst_9 = arith.constant 1.000000e+00 : f32
    %16 = vector.broadcast %cst_9 : f32 to vector<8x16xf32>
    %17 = arith.addf %16, %15 : vector<8x16xf32>
    %cst_10 = arith.constant 1.000000e+00 : f32
    %18 = vector.broadcast %cst_10 : f32 to vector<8x16xf32>
    %19 = arith.divf %18, %17 : vector<8x16xf32>
    %c0_11 = arith.constant 0 : index
    %c0_12 = arith.constant 0 : index
    %20 = vector.load %arg4[%c0_11, %c0_12] : memref<8x16xf32, #tpu.memory_space<vmem>>, vector<8x16xf32>
    tpu.vector_store %arg4[%c0_11, %c0_12], %19 {strides = array<i32>} : memref<8x16xf32, #tpu.memory_space<vmem>>, vector<8x16xf32>,
    return
  }
  func.func @transform_0(%arg0: i32) -> (i32, i32) {
    %c0_i32 = arith.constant 0 : i32
    %c0_i32_0 = arith.constant 0 : i32
    return %arg0, %c0_i32 : i32, i32
  }
  func.func @transform_1(%arg0: i32) -> (i32, i32) {
    %c0_i32 = arith.constant 0 : i32
    %c0_i32_0 = arith.constant 0 : i32
    %c0_i32_1 = arith.constant 0 : i32
    return %c0_i32, %c0_i32_0 : i32, i32
  }
  func.func @transform_2(%arg0: i32) -> (i32, i32) {
    %c0_i32 = arith.constant 0 : i32
    %c0_i32_0 = arith.constant 0 : i32
    %c0_i32_1 = arith.constant 0 : i32
    return %c0_i32, %c0_i32_0 : i32, i32
  }
  func.func @transform_3(%arg0: i32) -> (i32, i32) {
    %c0_i32 = arith.constant 0 : i32
    %c0_i32_0 = arith.constant 0 : i32
    return %arg0, %c0_i32 : i32, i32
  }
}

module attributes {stable_mosaic.version = 11 : i64} {
  func.func @_fd_kernel_resident(%arg0: i32, %arg1: memref<8x32xf32, #tpu.memory_space<vmem>>, %arg2: memref<32x128xbf16, #tpu.memory_space<vmem>>, %arg3: memref<128x16xbf16, #tpu.memory_space<vmem>>, %arg4: memref<8x16xf32, #tpu.memory_space<vmem>>) attributes {dimension_semantics = [#tpu.dimension_semantics<parallel>], iteration_bounds = array<i64: 1>, scalar_prefetch = 0 : i64, scratch_operands = 0 : i64, tpu.core_type = #tpu.core_type<tc>, window_params = [{transform_indices = @transform_0, window_bounds = array<i64: 8, 32>}, {pipeline_mode = #tpu.pipeline_mode<synchronous>, transform_indices = @transform_1, window_bounds = array<i64: 32, 128>}, {pipeline_mode = #tpu.pipeline_mode<synchronous>, transform_indices = @transform_2, window_bounds = array<i64: 128, 16>}, {transform_indices = @transform_3, window_bounds = array<i64: 8, 16>}]} {
    %c0 = arith.constant 0 : index
    %c0_0 = arith.constant 0 : index
    %0 = vector.load %arg2[%c0, %c0_0] : memref<32x128xbf16, #tpu.memory_space<vmem>>, vector<32x128xbf16>
    %c0_1 = arith.constant 0 : index
    %c0_2 = arith.constant 0 : index
    %1 = vector.load %arg3[%c0_1, %c0_2] : memref<128x16xbf16, #tpu.memory_space<vmem>>, vector<128x16xbf16>
    %c0_3 = arith.constant 0 : index
    %c0_4 = arith.constant 0 : index
    %2 = vector.load %arg1[%c0_3, %c0_4] : memref<8x32xf32, #tpu.memory_space<vmem>>, vector<8x32xf32>
    %3 = arith.truncf %2 : vector<8x32xf32> to vector<8x32xbf16>
    %cst = arith.constant dense<0.000000e+00> : vector<8x128xf32>
    %4 = tpu.matmul %3, %0, %cst {dimension_numbers = #tpu.dot_dimension_numbers<[1], [0], [0], [1], [0, 0, 1, 1], [], []>} : vector<8x32xbf16>, vector<32x128xbf16>, vector<8x128xf32> -> vector<8x128xf32>
    %cst_5 = arith.constant 0.000000e+00 : f32
    %5 = vector.broadcast %cst_5 : f32 to vector<8x128xf32>
    %6 = arith.subf %5, %4 : vector<8x128xf32>
    %7 = math.exp %6 : vector<8x128xf32>
    %cst_6 = arith.constant 1.000000e+00 : f32
    %8 = vector.broadcast %cst_6 : f32 to vector<8x128xf32>
    %9 = arith.addf %8, %7 : vector<8x128xf32>
    %10 = tpu.reciprocal %9 {approx = true} : vector<8x128xf32> -> vector<8x128xf32>
    %11 = arith.truncf %10 : vector<8x128xf32> to vector<8x128xbf16>
    %cst_7 = arith.constant dense<0.000000e+00> : vector<8x16xf32>
    %12 = tpu.matmul %11, %1, %cst_7 {dimension_numbers = #tpu.dot_dimension_numbers<[1], [0], [0], [1], [0, 0, 1, 1], [], []>} : vector<8x128xbf16>, vector<128x16xbf16>, vector<8x16xf32> -> vector<8x16xf32>
    %cst_8 = arith.constant 0.000000e+00 : f32
    %13 = vector.broadcast %cst_8 : f32 to vector<8x16xf32>
    %14 = arith.subf %13, %12 : vector<8x16xf32>
    %15 = math.exp %14 : vector<8x16xf32>
    %cst_9 = arith.constant 1.000000e+00 : f32
    %16 = vector.broadcast %cst_9 : f32 to vector<8x16xf32>
    %17 = arith.addf %16, %15 : vector<8x16xf32>
    %cst_10 = arith.constant 1.000000e+00 : f32
    %18 = vector.broadcast %cst_10 : f32 to vector<8x16xf32>
    %19 = arith.divf %18, %17 : vector<8x16xf32>
    %c0_11 = arith.constant 0 : index
    %c0_12 = arith.constant 0 : index
    %20 = vector.load %arg4[%c0_11, %c0_12] : memref<8x16xf32, #tpu.memory_space<vmem>>, vector<8x16xf32>
    tpu.vector_store %arg4[%c0_11, %c0_12], %19 {strides = array<i32>} : memref<8x16xf32, #tpu.memory_space<vmem>>, vector<8x16xf32>,
    return
  }
  func.func @transform_0(%arg0: i32) -> (i32, i32) {
    %c0_i32 = arith.constant 0 : i32
    %c0_i32_0 = arith.constant 0 : i32
    return %arg0, %c0_i32 : i32, i32
  }
  func.func @transform_1(%arg0: i32) -> (i32, i32) {
    %c0_i32 = arith.constant 0 : i32
    %c0_i32_0 = arith.constant 0 : i32
    %c0_i32_1 = arith.constant 0 : i32
    return %c0_i32, %c0_i32_0 : i32, i32
  }
  func.func @transform_2(%arg0: i32) -> (i32, i32) {
    %c0_i32 = arith.constant 0 : i32
    %c0_i32_0 = arith.constant 0 : i32
    %c0_i32_1 = arith.constant 0 : i32
    return %c0_i32, %c0_i32_0 : i32, i32
  }
  func.func @transform_3(%arg0: i32) -> (i32, i32) {
    %c0_i32 = arith.constant 0 : i32
    %c0_i32_0 = arith.constant 0 : i32
    return %arg0, %c0_i32 : i32, i32
  }
}

</mosaic_0001>

<bundles_post_ra>
// kernel: tpu_custom_call.1
= control target key start
LH: loop header
LB: loop body
LE: loop exit
PB: predicated region body
PF: predicated region fallthrough
CT: control target
= control target key end

     0   :  { %v306_v1 = vmov 0.0   ;;  %vm307_vm0 = vmmov 0   ;;  %vm50_vm1 = vcmask 261120   ;;  %s374_s0 = inlined_call_operand.vmem [shape: f32[8,32], index: 0, kind: input, shape index: {}]   ;;  %s375_s1 = inlined_call_operand.vmem [shape: bf16[32,128], index: 1, kind: input, shape index: {}]   ;;  %s376_s2 = inlined_call_operand.vmem [shape: bf16[128,16], index: 2, kind: input, shape index: {}]   ;;  %s377_s3 = inlined_call_operand.hbm [shape: f32[8,16], index: 3, kind: output, shape index: {}]  }
   0x1   :  { %v264_v0 = vld [vmem:[%s375_s1] sm:$0xff]   ;;  %233 = vmatprep.subr.bf16.mxu0 %v306_v1  ;;  %v265_v2 = vld [vmem:[%s375_s1 + $0x8] sm:$0xff]   ;;  %241 = vmatprep.subr.bf16.mxu1 %v306_v1 }
   0x2   :  { %234 = vmatpush3.bf16.msra.mxu0 %v264_v0  ;;  %237 = vmatprep.mubr.msk.bf16.mxu0 %vm307_vm0, %v306_v1  ;;  %v36_v3 = vld [vmem:[%s374_s0] sm:$0xff] }
   0x3   :  { %235 = vmatprep.subr.bf16.mxu0 %v306_v1  ;;  %257 = vmatprep.mubr.msk.bf16.mxu1 %vm307_vm0, %v306_v1  ;;  %v37_v4 = vpack.c.bf16 %v36_v3, %v36_v3 }
   0x6   :  { %236 = vmatpush3.bf16.msra.mxu0 %v265_v2 }
   0x7   :  { %8 = vsyncpa [#allocation3], 0  ;;  %v266_v5 = vld [vmem:[%s376_s2] sm:$0xff]   ;;  %v267_v6 = vld [vmem:[%s376_s2 + $0x8] sm:$0xff]   ;;  %vm194_vm2 = vcmask 130048  }
   0x8   :  { %242 = vmatpush3.bf16.msra.mxu1 %v266_v5  ;;  %v268_v7 = vld [vmem:[%s376_s2 + $0x10] sm:$0xff]   ;;  %v269_v8 = vld [vmem:[%s376_s2 + $0x18] sm:$0xff]   ;;  %v270_v9 = vld [vmem:[%s376_s2 + $0x20] sm:$0xff]  }
   0x9   :  { %238 = vmatmul.mubr.msk.bf16.vlgmr.msra.gmra.mrb[0].mxu0 %vm50_vm1, %v37_v4  ;;  %243 = vmatprep.subr.bf16.mxu1 %v306_v1  ;;  %v271_v10 = vld [vmem:[%s376_s2 + $0x28] sm:$0xff]   ;;  %v272_v11 = vld [vmem:[%s376_s2 + $0x30] sm:$0xff]   ;;  %v273_v12 = vld [vmem:[%s376_s2 + $0x38] sm:$0xff]   ;;  %s308_s2 = smov [#allocation2]  }
   0xa   :  { %s202_s5 = sshll.u32 %s308_s2, 4  ;;  %s203_s5 = int_to_ptr.vmem [resolvable:$true] %s202_s5 }
   0xb   :  { %s282_s6 = scalar_lea.vmem %s203_s5, 128  ;;  %p287_p1 = scmp.lt.s32.totalorder %s203_s5, %s203_s5 }
   0xc   :  { %244 = vmatpush3.bf16.msra.mxu1 %v267_v6  ;;  %p283_p0 = scmp.ne.s32.totalorder %s203_s5, %s282_s6  ;;  %p288_p2 = scmp.lt.s32.totalorder %s282_s6, %s282_s6 }
   0xd   :  { %245 = vmatprep.subr.bf16.mxu1 %v306_v1 }
   0xe   :  { %p289_p3 = por %p288_p2, %p287_p1 }
  0x10   :  { %246 = vmatpush3.bf16.msra.mxu1 %v268_v7  ;;  %p290_p4 = pnand %p289_p3, %p283_p0 }
  0x11   :  { %247 = vmatprep.subr.bf16.mxu1 %v306_v1 }
  0x14   :  { %248 = vmatpush3.bf16.msra.mxu1 %v269_v8 }
  0x15   :  { %249 = vmatprep.subr.bf16.mxu1 %v306_v1 }
  0x18   :  { %250 = vmatpush3.bf16.msra.mxu1 %v270_v9 }
  0x19   :  { %251 = vmatprep.subr.bf16.mxu1 %v306_v1 }
  0x1c   :  { %252 = vmatpush3.bf16.msra.mxu1 %v271_v10 }
  0x1d   :  { %253 = vmatprep.subr.bf16.mxu1 %v306_v1 }
  0x20   :  { %254 = vmatpush3.bf16.msra.mxu1 %v272_v11 }
  0x21   :  { %255 = vmatprep.subr.bf16.mxu1 %v306_v1 }
  0x24   :  { %256 = vmatpush3.bf16.msra.mxu1 %v273_v12 }
  0xdc   :  { %v88_v13 = vpop.f32.mrb[0].mxu0 }
  0xdd   :  { %v94_v14 = vsub.f32 0.0, %v88_v13  ;;  %v239_v15 = vpop.f32.mrb[1].mxu0 }
  0xde   :  { %v91_v16 = vpop.f32.mrb[2].mxu0 }
  0xdf   :  { %v95_v17 = vmul.f32 1.442695, %v94_v14  ;;  %v240_v18 = vpop.f32.mrb[3].mxu0 }
  0xe1   :  { %274 = vpow2.f32 %v95_v17 }
  0xeb   :  { %v275_v19 = vpop.eup %274 }
  0xec   :  { %v97_v20 = vadd.f32 1.0, %v275_v19 }
  0xee   :  { %276 = vrcp.f32 %v97_v20 }
  0xf8   :  { %v277_v21 = vpop.eup %276 }
  0xf9   :  { %v99_v22 = vpack.c.bf16 %v277_v21, %v277_v21 }
  0xfb   :  { %258 = vmatmul.mubr.bf16.vlgmr.msra.gmra.mrb[0].mxu1 %v99_v22 }
 0x1ce   :  { %v182_v23 = vpop.f32.mrb[0].mxu1 }
 0x1cf   :  { %v188_v24 = vsub.f32 0.0, %v182_v23  ;;  %v259_v25 = vpop.f32.mrb[1].mxu1 }
 0x1d0   :  { %v185_v26 = vpop.f32.mrb[2].mxu1 }
 0x1d1   :  { %v189_v27 = vmul.f32 1.442695, %v188_v24  ;;  %v260_v28 = vpop.f32.mrb[3].mxu1 }
 0x1d3   :  { %278 = vpow2.f32 %v189_v27 }
 0x1dd   :  { %v279_v29 = vpop.eup %278 }
 0x1de   :  { %v191_v30 = vadd.f32 1.0, %v279_v29 }
 0x1e0   :  { %280 = vrcp.f32 %v191_v30 }
 0x1ea   :  { %v281_v31 = vpop.eup %280 }
 0x1eb   :  { %195 = vst.msk [vmem:[#allocation2] sm:$0xff] %vm194_vm2, %v281_v31 }
 0x1ec   :  { %293 = shalt.err (!%p290_p4)
}
 0x1ed   :  { %s294_s9 = scalar_lea.hbm %s377_s3, 128 }
 0x1ee   :  { %p295_p5 = scmp.ne.s32.totalorder %s377_s3, %s294_s9  ;;  %p298_p6 = scmp.lt.u32.totalorder %s294_s9, %s377_s3 }
 0x1f0   :  { %p300_p7 = pnand %p298_p6, %p295_p5 }
 0x1f2   :  { %303 = shalt.err (!%p300_p7)
}
 0x1f3   :  { %205 = dma.vmem_to_hbm [thread:$0]  %s203_s5, 128, %s377_s3, [#allocation3]  }
 0x1f4   :  { %304 = dma.done.wait [#allocation3], 128  }
 0x1f5   :  { %305 = vsyncadd [#allocation3], 4294967168 }
 0x1f6   :  { %209 = vsyncpa [#allocation3], 1 }

// kernel: tpu_custom_call.1
= control target key start
LH: loop header
LB: loop body
LE: loop exit
PB: predicated region body
PF: predicated region fallthrough
CT: control target
= control target key end

     0   :  { %v306_v1 = vmov 0.0   ;;  %vm307_vm0 = vmmov 0   ;;  %vm50_vm1 = vcmask 261120   ;;  %s374_s0 = inlined_call_operand.vmem [shape: f32[8,32], index: 0, kind: input, shape index: {}]   ;;  %s375_s1 = inlined_call_operand.vmem [shape: bf16[32,128], index: 1, kind: input, shape index: {}]   ;;  %s376_s2 = inlined_call_operand.vmem [shape: bf16[128,16], index: 2, kind: input, shape index: {}]   ;;  %s377_s3 = inlined_call_operand.hbm [shape: f32[8,16], index: 3, kind: output, shape index: {}]  }
   0x1   :  { %v264_v0 = vld [vmem:[%s375_s1] sm:$0xff]   ;;  %233 = vmatprep.subr.bf16.mxu0 %v306_v1  ;;  %v265_v2 = vld [vmem:[%s375_s1 + $0x8] sm:$0xff]   ;;  %241 = vmatprep.subr.bf16.mxu1 %v306_v1 }
   0x2   :  { %234 = vmatpush3.bf16.msra.mxu0 %v264_v0  ;;  %237 = vmatprep.mubr.msk.bf16.mxu0 %vm307_vm0, %v306_v1  ;;  %v36_v3 = vld [vmem:[%s374_s0] sm:$0xff] }
   0x3   :  { %235 = vmatprep.subr.bf16.mxu0 %v306_v1  ;;  %257 = vmatprep.mubr.msk.bf16.mxu1 %vm307_vm0, %v306_v1  ;;  %v37_v4 = vpack.c.bf16 %v36_v3, %v36_v3 }
   0x6   :  { %236 = vmatpush3.bf16.msra.mxu0 %v265_v2 }
   0x7   :  { %8 = vsyncpa [#allocation3], 0  ;;  %v266_v5 = vld [vmem:[%s376_s2] sm:$0xff]   ;;  %v267_v6 = vld [vmem:[%s376_s2 + $0x8] sm:$0xff]   ;;  %vm194_vm2 = vcmask 130048  }
   0x8   :  { %242 = vmatpush3.bf16.msra.mxu1 %v266_v5  ;;  %v268_v7 = vld [vmem:[%s376_s2 + $0x10] sm:$0xff]   ;;  %v269_v8 = vld [vmem:[%s376_s2 + $0x18] sm:$0xff]   ;;  %v270_v9 = vld [vmem:[%s376_s2 + $0x20] sm:$0xff]  }
   0x9   :  { %238 = vmatmul.mubr.msk.bf16.vlgmr.msra.gmra.mrb[0].mxu0 %vm50_vm1, %v37_v4  ;;  %243 = vmatprep.subr.bf16.mxu1 %v306_v1  ;;  %v271_v10 = vld [vmem:[%s376_s2 + $0x28] sm:$0xff]   ;;  %v272_v11 = vld [vmem:[%s376_s2 + $0x30] sm:$0xff]   ;;  %v273_v12 = vld [vmem:[%s376_s2 + $0x38] sm:$0xff]   ;;  %s308_s2 = smov [#allocation2]  }
   0xa   :  { %s202_s5 = sshll.u32 %s308_s2, 4  ;;  %s203_s5 = int_to_ptr.vmem [resolvable:$true] %s202_s5 }
   0xb   :  { %s282_s6 = scalar_lea.vmem %s203_s5, 128  ;;  %p287_p1 = scmp.lt.s32.totalorder %s203_s5, %s203_s5 }
   0xc   :  { %244 = vmatpush3.bf16.msra.mxu1 %v267_v6  ;;  %p283_p0 = scmp.ne.s32.totalorder %s203_s5, %s282_s6  ;;  %p288_p2 = scmp.lt.s32.totalorder %s282_s6, %s282_s6 }
   0xd   :  { %245 = vmatprep.subr.bf16.mxu1 %v306_v1 }
   0xe   :  { %p289_p3 = por %p288_p2, %p287_p1 }
  0x10   :  { %246 = vmatpush3.bf16.msra.mxu1 %v268_v7  ;;  %p290_p4 = pnand %p289_p3, %p283_p0 }
  0x11   :  { %247 = vmatprep.subr.bf16.mxu1 %v306_v1 }
  0x14   :  { %248 = vmatpush3.bf16.msra.mxu1 %v269_v8 }
  0x15   :  { %249 = vmatprep.subr.bf16.mxu1 %v306_v1 }
  0x18   :  { %250 = vmatpush3.bf16.msra.mxu1 %v270_v9 }
  0x19   :  { %251 = vmatprep.subr.bf16.mxu1 %v306_v1 }
  0x1c   :  { %252 = vmatpush3.bf16.msra.mxu1 %v271_v10 }
  0x1d   :  { %253 = vmatprep.subr.bf16.mxu1 %v306_v1 }
  0x20   :  { %254 = vmatpush3.bf16.msra.mxu1 %v272_v11 }
  0x21   :  { %255 = vmatprep.subr.bf16.mxu1 %v306_v1 }
  0x24   :  { %256 = vmatpush3.bf16.msra.mxu1 %v273_v12 }
  0xdc   :  { %v88_v13 = vpop.f32.mrb[0].mxu0 }
  0xdd   :  { %v94_v14 = vsub.f32 0.0, %v88_v13  ;;  %v239_v15 = vpop.f32.mrb[1].mxu0 }
  0xde   :  { %v91_v16 = vpop.f32.mrb[2].mxu0 }
  0xdf   :  { %v95_v17 = vmul.f32 1.442695, %v94_v14  ;;  %v240_v18 = vpop.f32.mrb[3].mxu0 }
  0xe1   :  { %274 = vpow2.f32 %v95_v17 }
  0xeb   :  { %v275_v19 = vpop.eup %274 }
  0xec   :  { %v97_v20 = vadd.f32 1.0, %v275_v19 }
  0xee   :  { %276 = vrcp.f32 %v97_v20 }
  0xf8   :  { %v277_v21 = vpop.eup %276 }
  0xf9   :  { %v99_v22 = vpack.c.bf16 %v277_v21, %v277_v21 }
  0xfb   :  { %258 = vmatmul.mubr.bf16.vlgmr.msra.gmra.mrb[0].mxu1 %v99_v22 }
 0x1ce   :  { %v182_v23 = vpop.f32.mrb[0].mxu1 }
 0x1cf   :  { %v188_v24 = vsub.f32 0.0, %v182_v23  ;;  %v259_v25 = vpop.f32.mrb[1].mxu1 }
 0x1d0   :  { %v185_v26 = vpop.f32.mrb[2].mxu1 }
 0x1d1   :  { %v189_v27 = vmul.f32 1.442695, %v188_v24  ;;  %v260_v28 = vpop.f32.mrb[3].mxu1 }
 0x1d3   :  { %278 = vpow2.f32 %v189_v27 }
 0x1dd   :  { %v279_v29 = vpop.eup %278 }
 0x1de   :  { %v191_v30 = vadd.f32 1.0, %v279_v29 }
 0x1e0   :  { %280 = vrcp.f32 %v191_v30 }
 0x1ea   :  { %v281_v31 = vpop.eup %280 }
 0x1eb   :  { %195 = vst.msk [vmem:[#allocation2] sm:$0xff] %vm194_vm2, %v281_v31 }
 0x1ec   :  { %293 = shalt.err (!%p290_p4)
}
 0x1ed   :  { %s294_s9 = scalar_lea.hbm %s377_s3, 128 }
 0x1ee   :  { %p295_p5 = scmp.ne.s32.totalorder %s377_s3, %s294_s9  ;;  %p298_p6 = scmp.lt.u32.totalorder %s294_s9, %s377_s3 }
 0x1f0   :  { %p300_p7 = pnand %p298_p6, %p295_p5 }
 0x1f2   :  { %303 = shalt.err (!%p300_p7)
}
 0x1f3   :  { %205 = dma.vmem_to_hbm [thread:$0]  %s203_s5, 128, %s377_s3, [#allocation3]  }
 0x1f4   :  { %304 = dma.done.wait [#allocation3], 128  }
 0x1f5   :  { %305 = vsyncadd [#allocation3], 4294967168 }
 0x1f6   :  { %209 = vsyncpa [#allocation3], 1 }

</bundles_post_ra>
